<compile_context>
chip_gen: v6e
topology: v6e:2x2x1
jax: 0.10.0
libtpu: 0.0.40
codegen_flags: <defaults>
</compile_context>

<pallas_src>
import jax
import jax.numpy as jnp
from jax.experimental import pallas as pl
from jax.experimental.pallas import tpu as pltpu


def _add_scalar_relu_kernel(v1_ref, other_ref, o_ref):
    # v1_ref: SMEM, shape (1,) — precomputed scalar affine x1*W + b.
    # other_ref / o_ref: (3,3) VMEM tile (one vreg, masked but tiny).
    v1 = v1_ref[0]                                            # scalar load (SMEM)
    o_ref[...] = jnp.maximum(other_ref[...] + v1, jnp.float32(0.0))   # VPU add+relu


# Honest tiny cost estimate: ~9 adds + ~9 max + 1 fma ≈ 12–20 flops,
# ~(9+9)*4 B tile traffic + a few scalar bytes ≈ 84 B, no transcendentals.
_COST = pl.CostEstimate(flops=12, transcendentals=0, bytes_accessed=84)


def _as_f32(a):
    return a if a.dtype == jnp.float32 else a.astype(jnp.float32)


@jax.jit
def model_forward(x1, weight, bias, other):
    """x1: (1,1), weight: (1,1), bias: (1,), other: (3,3) -> (3,3) f32."""
    # Fold Linear(1,1) into one fused scalar fma in the wrapper (single XLA op,
    # no concat, no extra HBM round trip) and ship a single SMEM word.
    v1 = (_as_f32(x1).reshape(()) * _as_f32(weight).reshape(())
          + _as_f32(bias).reshape(())).reshape(1)
    other = _as_f32(other)

    return pl.pallas_call(
        _add_scalar_relu_kernel,
        out_shape=jax.ShapeDtypeStruct(other.shape, jnp.float32),
        in_specs=[
            pl.BlockSpec(memory_space=pltpu.MemorySpace.SMEM),   # (1,) scalar
            pl.BlockSpec(memory_space=pltpu.MemorySpace.VMEM),   # (3,3) tile
        ],
        out_specs=pl.BlockSpec(memory_space=pltpu.MemorySpace.VMEM),
        input_output_aliases={1: 0},      # write back in place of `other`
        cost_estimate=_COST,
    )(v1, other)


if __name__ == "__main__":
    key = jax.random.PRNGKey(0)
    k_x, k_w, k_b, k_o = jax.random.split(key, 4)

    # Deterministic stand-ins for nn.Linear(1, 1) params and the `other` buffer.
    x1 = jax.random.normal(k_x, (1, 1), dtype=jnp.float32)
    weight = jax.random.normal(k_w, (1, 1), dtype=jnp.float32)
    bias = jax.random.normal(k_b, (1,), dtype=jnp.float32)
    other = jax.random.normal(k_o, (3, 3), dtype=jnp.float32)

    out = model_forward(x1, weight, bias, other)
    jax.block_until_ready(out)

    # Pure-JAX reference: relu(x1 @ W.T + b + other)
    ref = jnp.maximum(x1 @ weight.T + bias + other, 0.0)
    assert out.shape == (3, 3)
    assert jnp.allclose(out, ref, atol=1e-6), (out, ref)

    print("KERNEL_OK")
</pallas_src>

<mosaic_0001>
module attributes {stable_mosaic.version = 11 : i64} {
  func.func @_add_scalar_relu_kernel(%arg0: memref<1xf32, #tpu.memory_space<smem>>, %arg1: memref<3x3xf32, #tpu.memory_space<vmem>>, %arg2: memref<3x3xf32, #tpu.memory_space<vmem>>) attributes {dimension_semantics = [], scalar_prefetch = 0 : i64, scratch_operands = 0 : i64, tpu.core_type = #tpu.core_type<tc>} {
    %c0 = arith.constant 0 : index
    %0 = memref.load %arg0[%c0] : memref<1xf32, #tpu.memory_space<smem>>
    %c0_0 = arith.constant 0 : index
    %c0_1 = arith.constant 0 : index
    %1 = vector.load %arg1[%c0_0, %c0_1] : memref<3x3xf32, #tpu.memory_space<vmem>>, vector<3x3xf32>
    %2 = vector.broadcast %0 : f32 to vector<3x3xf32>
    %3 = arith.addf %1, %2 : vector<3x3xf32>
    %cst = arith.constant 0.000000e+00 : f32
    %4 = vector.broadcast %cst : f32 to vector<3x3xf32>
    %5 = arith.maximumf %3, %4 : vector<3x3xf32>
    %c0_2 = arith.constant 0 : index
    %c0_3 = arith.constant 0 : index
    %6 = vector.load %arg2[%c0_2, %c0_3] : memref<3x3xf32, #tpu.memory_space<vmem>>, vector<3x3xf32>
    tpu.vector_store %arg2[%c0_2, %c0_3], %5 {strides = array<i32>} : memref<3x3xf32, #tpu.memory_space<vmem>>, vector<3x3xf32>,
    return
  }
}

</mosaic_0001>

<bundles_post_ra>
// kernel: model_forward.1
= control target key start
LH: loop header
LB: loop body
LE: loop exit
PB: predicated region body
PF: predicated region fallthrough
CT: control target
= control target key end

     0   :  { %8 = vsyncpa [#allocation4], 0  ;;  %s119_s0 = inlined_call_operand.<no memory space> [shape: f32[1], index: 0, kind: input, shape index: {}]   ;;  %s120_s1 = inlined_call_operand.hbm [shape: f32[3,3], index: 1, kind: input, shape index: {}, may-alias: {1,2}]   ;;  %s121_s2 = inlined_call_operand.hbm [shape: f32[3,3], index: 2, kind: output, shape index: {}, may-alias: {1,2}]  }
   0x1   :  { %9 = vsyncpa [#allocation5], 0  ;;  %s93_s9 = smov [#allocation3]  }
   0x2   :  { %s18_s10 = sshll.u32 %s93_s9, 4  ;;  %s19_s10 = int_to_ptr.vmem [resolvable:$true] %s18_s10 }
   0x3   :  { %s57_s11 = scalar_lea.vmem %s19_s10, 64  ;;  %p62_p1 = scmp.lt.s32.totalorder %s19_s10, %s19_s10 }
   0x4   :  { %p58_p0 = scmp.ne.s32.totalorder %s19_s10, %s57_s11  ;;  %p63_p2 = scmp.lt.s32.totalorder %s57_s11, %s57_s11 }
   0x6   :  { %p64_p3 = por %p63_p2, %p62_p1 }
   0x8   :  { %p65_p4 = pnand %p64_p3, %p58_p0 }
   0xa   :  { %68 = shalt.err (!%p65_p4)
}
   0xb   :  { %21 = dma.hbm_to_vmem [thread:$0]  %s120_s1, 64, %s19_s10, [#allocation4]  }
   0xc   :  { %89 = dma.done.wait [#allocation4], 64  }
   0xd   :  { %90 = vsyncadd [#allocation4], 4294967232  ;;  %v27_v0 = vstv %s119_s0  ;;  %v26_v1 = vld [vmem:[#allocation3] sm:$0x7]  ;;  %s94_s16 = smov [#allocation6]   ;;  %vm30_vm0 = vcmask 18432  }
   0xe   :  { %s38_s17 = sshll.u32 %s94_s16, 4  ;;  %v28_v2 = vadd.f32 %v27_v0, %v26_v1  ;;  %s39_s17 = int_to_ptr.vmem [resolvable:$true] %s38_s17 }
   0xf   :  { %s69_s18 = scalar_lea.vmem %s39_s17, 64  ;;  %p74_p6 = scmp.lt.s32.totalorder %s39_s17, %s39_s17 }
  0x10   :  { %v29_v3 = vmax.f32 %v28_v2, 0.0  ;;  %p70_p5 = scmp.ne.s32.totalorder %s39_s17, %s69_s18  ;;  %p75_p7 = scmp.lt.s32.totalorder %s69_s18, %s69_s18 }
  0x12   :  { %31 = vst.msk [vmem:[#allocation6] sm:$0x7] %vm30_vm0, %v29_v3  ;;  %p76_p8 = por %p75_p7, %p74_p6 }
  0x14   :  { %p77_p9 = pnand %p76_p8, %p70_p5 }
  0x16   :  { %80 = shalt.err (!%p77_p9)
}
  0x17   :  { %41 = dma.vmem_to_hbm [thread:$0]  %s39_s17, 64, %s121_s2, [#allocation5]  }
  0x18   :  { %91 = dma.done.wait [#allocation5], 64  }
  0x19   :  { %92 = vsyncadd [#allocation5], 4294967232 }
  0x1a   :  { %45 = vsyncpa [#allocation4], 1 }
  0x1b   :  { %46 = vsyncpa [#allocation5], 1 }

</bundles_post_ra>
